<compile_context>
chip_gen: v7x
topology: tpu7x:2x2x1
jax: 0.10.0
libtpu: 0.0.40
codegen_flags: <defaults>
</compile_context>

<pallas_src>
import functools

import jax
import jax.numpy as jnp
from jax.experimental import pallas as pl
from jax.experimental.pallas import tpu as pltpu

NEG_SLOPE = 0.01      # F.leaky_relu default negative_slope
LANE = 128


def _round_up(x, m):
    return (x + m - 1) // m * m


def _leaky_relu(x):
    return jnp.where(x >= 0, x, NEG_SLOPE * x)


def _policy_kernel(x_ref, w1_ref, b1_ref, w2_ref, b2_ref, w3_ref, b3_ref,
                   *rest, out_dim, explore):
    """One batch tile: 3 matmuls + leaky_relu + softmax + action selection.

    NOTE: when B is not a multiple of the tile size, the last grid step
    computes on out-of-bounds garbage rows.  That is safe because every op
    here is row-independent and Pallas masks the partial output writes — do
    NOT add a cross-row reduction to this kernel without revisiting that.
    """
    if explore:
        gumbel_ref, action_ref, probs_ref = rest
    else:
        action_ref, probs_ref = rest

    x = x_ref[...]

    # fc1 + leaky_relu   (bf16 MXU operands, f32 accumulation; VPU math f32)
    h1 = _leaky_relu(
        jnp.dot(x.astype(jnp.bfloat16), w1_ref[...],
                preferred_element_type=jnp.float32) + b1_ref[...])

    # fc2 + leaky_relu
    h2 = _leaky_relu(
        jnp.dot(h1.astype(jnp.bfloat16), w2_ref[...],
                preferred_element_type=jnp.float32) + b2_ref[...])

    # fc3 at a lane-dense padded width (MXU N=128, zero-padded columns), then
    # slice back to the real out_dim for all row-wise math below.
    logits = (jnp.dot(h2.astype(jnp.bfloat16), w3_ref[...],
                      preferred_element_type=jnp.float32)
              + b3_ref[...])[:, :out_dim]

    # numerically stable softmax; exact division (VALU has plenty of slack)
    m = jnp.max(logits, axis=-1, keepdims=True)
    e = jnp.exp(logits - m)
    probs = e / jnp.sum(e, axis=-1, keepdims=True)
    probs_ref[...] = probs            # narrow (tb, out_dim) store -> ~16x less HBM writeback

    # action: Gumbel-max categorical sample (explore) or greedy argmax.
    if explore:
        scores = logits + gumbel_ref[...]
    else:
        scores = logits

    # argmax (first maximal index), hand-rolled for robust Mosaic lowering
    best = jnp.max(scores, axis=-1, keepdims=True)
    col = jax.lax.broadcasted_iota(jnp.int32, scores.shape, 1)
    idx = jnp.min(jnp.where(scores >= best, col, out_dim),
                  axis=-1, keepdims=True)
    action_ref[...] = idx.astype(jnp.int32)


@functools.partial(jax.jit, static_argnames=("out_dim", "explore"))
def discrete_policy_net_forward(x, packed_params, out_dim, *, explore=True, key=None):
    """Returns (action [B,1] int32, probs [B,out_dim] f32)."""
    # TODO(synk): optional mask / reg / log / entropy / all outputs of the
    # original forward() are not fused; only the default (action, probs) path.
    w1, b1, w2, b2, w3p, b3p = packed_params
    B, in_dim = x.shape
    hid = w1.shape[1]
    out_pad = w3p.shape[1]

    # Batch tiling (no wrapper pad/slice; Pallas masks the partial edge block):
    #   B <= 256        -> one resident tile
    #   256 < B <= 512  -> two 256-row tiles (shards across v7x's two TCs)
    #   B > 512         -> 512-row streaming tiles (amortize ~0.35us/step)
    b8 = _round_up(B, 8)
    if b8 <= 256:
        tb = b8
    elif b8 <= 512:
        tb = 256
    else:
        tb = 512
    grid = (pl.cdiv(B, tb),)

    in_specs = [
        pl.BlockSpec((tb, in_dim), lambda i: (i, 0)),     # x tile streams
        pl.BlockSpec(w1.shape, lambda i: (0, 0)),         # weights / biases
        pl.BlockSpec(b1.shape, lambda i: (0, 0)),         # stay VMEM-resident
        pl.BlockSpec(w2.shape, lambda i: (0, 0)),
        pl.BlockSpec(b2.shape, lambda i: (0, 0)),
        pl.BlockSpec(w3p.shape, lambda i: (0, 0)),
        pl.BlockSpec(b3p.shape, lambda i: (0, 0)),
    ]
    args = [x, w1, b1, w2, b2, w3p, b3p]

    if explore:
        if key is None:
            key = jax.random.PRNGKey(0)
        # Tiny (B, out_dim) Gumbel noise generated outside the kernel
        # (in-kernel TPU PRNG has no interpret/CPU lowering).
        gumbel = jax.random.gumbel(key, (B, out_dim), jnp.float32)
        in_specs.append(pl.BlockSpec((tb, out_dim), lambda i: (i, 0)))
        args.append(gumbel)

    flops = 2 * B * (in_dim * hid + hid * hid + hid * out_pad)
    bytes_accessed = (x.size * 4
                      + (w1.size + w2.size + w3p.size) * 2
                      + (b1.size + b2.size + b3p.size) * 4
                      + (B * out_dim * 4 if explore else 0)
                      + B * (out_dim + 1) * 4)
    cost = pl.CostEstimate(flops=flops, transcendentals=B * out_dim,
                           bytes_accessed=bytes_accessed)

    kernel = functools.partial(_policy_kernel, out_dim=out_dim, explore=explore)

    action, probs = pl.pallas_call(
        kernel,
        out_shape=(
            jax.ShapeDtypeStruct((B, 1), jnp.int32),
            jax.ShapeDtypeStruct((B, out_dim), jnp.float32),
        ),
        grid=grid,
        in_specs=in_specs,
        out_specs=(
            pl.BlockSpec((tb, 1), lambda i: (i, 0)),
            pl.BlockSpec((tb, out_dim), lambda i: (i, 0)),
        ),
        compiler_params=pltpu.CompilerParams(
            dimension_semantics=("parallel",),
            vmem_limit_bytes=32 * 1024 * 1024),
        cost_estimate=cost,
    )(*args)

    return action, probs


def init_params(key, input_dim, output_dim, hidden_dim=128):
    """PyTorch-style Linear init: U(-1/sqrt(fan_in), 1/sqrt(fan_in)), f32, [in,out]."""
    def linear(k, fan_in, fan_out):
        kw, kb = jax.random.split(k)
        bound = 1.0 / jnp.sqrt(jnp.float32(fan_in))
        w = jax.random.uniform(kw, (fan_in, fan_out), jnp.float32, -bound, bound)
        b = jax.random.uniform(kb, (1, fan_out), jnp.float32, -bound, bound)
        return w, b

    k1, k2, k3 = jax.random.split(key, 3)
    w1, b1 = linear(k1, input_dim, hidden_dim)
    w2, b2 = linear(k2, hidden_dim, hidden_dim)
    w3, b3 = linear(k3, hidden_dim, output_dim)
    return (w1, b1, w2, b2, w3, b3)


def pack_params(params, out_dim):
    """Cast weights to bf16; zero-pad fc3 to a lane-dense 128-wide MXU output.

    Padded columns carry zero weight/bias; the kernel slices logits back to
    out_dim before softmax / sampling, so the padding never leaks out.
    """
    w1, b1, w2, b2, w3, b3 = params
    hid = w3.shape[0]
    out_pad = max(LANE, _round_up(out_dim, LANE))
    w3p = jnp.zeros((hid, out_pad), jnp.float32).at[:, :out_dim].set(w3)
    b3p = jnp.zeros((1, out_pad), jnp.float32).at[:, :out_dim].set(b3)
    return (w1.astype(jnp.bfloat16), b1.astype(jnp.float32),
            w2.astype(jnp.bfloat16), b2.astype(jnp.float32),
            w3p.astype(jnp.bfloat16), b3p.astype(jnp.float32))


if __name__ == "__main__":
    INPUT_DIM = 16
    OUTPUT_DIM = 8
    HIDDEN_DIM = 128

    root = jax.random.PRNGKey(0)
    k_params, k_x1, k_x2, k_sample = jax.random.split(root, 4)

    params = init_params(k_params, INPUT_DIM, OUTPUT_DIM, HIDDEN_DIM)
    packed = pack_params(params, OUTPUT_DIM)

    def reference_probs(x):
        """Same math as the kernel (bf16 weights, f32 accumulation)."""
        w1, b1, w2, b2, w3p, b3p = packed
        h = _leaky_relu(jnp.dot(x.astype(jnp.bfloat16), w1,
                                preferred_element_type=jnp.float32) + b1)
        h = _leaky_relu(jnp.dot(h.astype(jnp.bfloat16), w2,
                                preferred_element_type=jnp.float32) + b2)
        logits = (jnp.dot(h.astype(jnp.bfloat16), w3p,
                          preferred_element_type=jnp.float32) + b3p)[:, :OUTPUT_DIM]
        return jax.nn.softmax(logits, axis=-1)

    # batch=20 also exercises the partial (masked) edge block path.
    for batch, kx in ((8, k_x1), (20, k_x2)):
        x = jax.random.normal(kx, (batch, INPUT_DIM), jnp.float32)

        # explore=True path: fused Gumbel-max categorical sample
        action, probs = discrete_policy_net_forward(
            x, packed, OUTPUT_DIM, explore=True, key=k_sample)
        action = jax.block_until_ready(action)
        probs = jax.block_until_ready(probs)

        assert action.shape == (batch, 1) and action.dtype == jnp.int32
        assert probs.shape == (batch, OUTPUT_DIM)
        assert bool(jnp.all((action >= 0) & (action < OUTPUT_DIM)))
        assert bool(jnp.all(jnp.abs(jnp.sum(probs, axis=-1) - 1.0) < 1e-4))
        assert bool(jnp.all(jnp.abs(probs - reference_probs(x)) < 2e-3))

        # explore=False path: greedy argmax must pick a maximal-probability action
        greedy, probs_g = discrete_policy_net_forward(
            x, packed, OUTPUT_DIM, explore=False)
        greedy = jax.block_until_ready(greedy)
        assert bool(jnp.all((greedy >= 0) & (greedy < OUTPUT_DIM)))
        picked = jnp.take_along_axis(probs_g, greedy, axis=1)[:, 0]
        assert bool(jnp.all(picked >= jnp.max(probs_g, axis=-1) - 1e-6))

    print("KERNEL_OK")
</pallas_src>

<mosaic_0001>
module attributes {stable_mosaic.version = 11 : i64} {
  func.func @_policy_kernel(%arg0: i32, %arg1: memref<8x16xf32, #tpu.memory_space<vmem>>, %arg2: memref<16x128xbf16, #tpu.memory_space<vmem>>, %arg3: memref<1x128xf32, #tpu.memory_space<vmem>>, %arg4: memref<128x128xbf16, #tpu.memory_space<vmem>>, %arg5: memref<1x128xf32, #tpu.memory_space<vmem>>, %arg6: memref<128x128xbf16, #tpu.memory_space<vmem>>, %arg7: memref<1x128xf32, #tpu.memory_space<vmem>>, %arg8: memref<8x8xf32, #tpu.memory_space<vmem>>, %arg9: memref<8x1xi32, #tpu.memory_space<vmem>>, %arg10: memref<8x8xf32, #tpu.memory_space<vmem>>) attributes {dimension_semantics = [#tpu.dimension_semantics<parallel>], iteration_bounds = array<i64: 1>, scalar_prefetch = 0 : i64, scratch_operands = 0 : i64, tpu.core_type = #tpu.core_type<tc>, window_params = [{transform_indices = @transform_0, window_bounds = array<i64: 8, 16>}, {pipeline_mode = #tpu.pipeline_mode<synchronous>, transform_indices = @transform_1, window_bounds = array<i64: 16, 128>}, {pipeline_mode = #tpu.pipeline_mode<synchronous>, transform_indices = @transform_2, window_bounds = array<i64: 1, 128>}, {pipeline_mode = #tpu.pipeline_mode<synchronous>, transform_indices = @transform_3, window_bounds = array<i64: 128, 128>}, {pipeline_mode = #tpu.pipeline_mode<synchronous>, transform_indices = @transform_4, window_bounds = array<i64: 1, 128>}, {pipeline_mode = #tpu.pipeline_mode<synchronous>, transform_indices = @transform_5, window_bounds = array<i64: 128, 128>}, {pipeline_mode = #tpu.pipeline_mode<synchronous>, transform_indices = @transform_6, window_bounds = array<i64: 1, 128>}, {transform_indices = @transform_7, window_bounds = array<i64: 8, 8>}, {transform_indices = @transform_8, window_bounds = array<i64: 8, 1>}, {transform_indices = @transform_9, window_bounds = array<i64: 8, 8>}]} {
    %c0 = arith.constant 0 : index
    %c0_0 = arith.constant 0 : index
    %0 = vector.load %arg1[%c0, %c0_0] : memref<8x16xf32, #tpu.memory_space<vmem>>, vector<8x16xf32>
    %1 = arith.truncf %0 : vector<8x16xf32> to vector<8x16xbf16>
    %c0_1 = arith.constant 0 : index
    %c0_2 = arith.constant 0 : index
    %2 = vector.load %arg2[%c0_1, %c0_2] : memref<16x128xbf16, #tpu.memory_space<vmem>>, vector<16x128xbf16>
    %cst = arith.constant dense<0.000000e+00> : vector<8x128xf32>
    %3 = tpu.matmul %1, %2, %cst {dimension_numbers = #tpu.dot_dimension_numbers<[1], [0], [0], [1], [0, 0, 1, 1], [], []>} : vector<8x16xbf16>, vector<16x128xbf16>, vector<8x128xf32> -> vector<8x128xf32>
    %c0_3 = arith.constant 0 : index
    %c0_4 = arith.constant 0 : index
    %4 = vector.load %arg3[%c0_3, %c0_4] : memref<1x128xf32, #tpu.memory_space<vmem>>, vector<1x128xf32>
    %5 = vector.broadcast %4 : vector<1x128xf32> to vector<8x128xf32>
    %6 = arith.addf %3, %5 : vector<8x128xf32>
    %cst_5 = arith.constant 0.000000e+00 : f32
    %7 = vector.broadcast %cst_5 : f32 to vector<8x128xf32>
    %8 = arith.cmpf oge, %6, %7 : vector<8x128xf32>
    %cst_6 = arith.constant 0.00999999977 : f32
    %9 = vector.broadcast %cst_6 : f32 to vector<8x128xf32>
    %10 = arith.mulf %9, %6 : vector<8x128xf32>
    %11 = arith.select %8, %6, %10 : vector<8x128xi1>, vector<8x128xf32>
    %12 = arith.truncf %11 : vector<8x128xf32> to vector<8x128xbf16>
    %c0_7 = arith.constant 0 : index
    %c0_8 = arith.constant 0 : index
    %13 = vector.load %arg4[%c0_7, %c0_8] : memref<128x128xbf16, #tpu.memory_space<vmem>>, vector<128x128xbf16>
    %cst_9 = arith.constant dense<0.000000e+00> : vector<8x128xf32>
    %14 = tpu.matmul %12, %13, %cst_9 {dimension_numbers = #tpu.dot_dimension_numbers<[1], [0], [0], [1], [0, 0, 1, 1], [], []>} : vector<8x128xbf16>, vector<128x128xbf16>, vector<8x128xf32> -> vector<8x128xf32>
    %c0_10 = arith.constant 0 : index
    %c0_11 = arith.constant 0 : index
    %15 = vector.load %arg5[%c0_10, %c0_11] : memref<1x128xf32, #tpu.memory_space<vmem>>, vector<1x128xf32>
    %16 = vector.broadcast %15 : vector<1x128xf32> to vector<8x128xf32>
    %17 = arith.addf %14, %16 : vector<8x128xf32>
    %cst_12 = arith.constant 0.000000e+00 : f32
    %18 = vector.broadcast %cst_12 : f32 to vector<8x128xf32>
    %19 = arith.cmpf oge, %17, %18 : vector<8x128xf32>
    %cst_13 = arith.constant 0.00999999977 : f32
    %20 = vector.broadcast %cst_13 : f32 to vector<8x128xf32>
    %21 = arith.mulf %20, %17 : vector<8x128xf32>
    %22 = arith.select %19, %17, %21 : vector<8x128xi1>, vector<8x128xf32>
    %23 = arith.truncf %22 : vector<8x128xf32> to vector<8x128xbf16>
    %c0_14 = arith.constant 0 : index
    %c0_15 = arith.constant 0 : index
    %24 = vector.load %arg6[%c0_14, %c0_15] : memref<128x128xbf16, #tpu.memory_space<vmem>>, vector<128x128xbf16>
    %cst_16 = arith.constant dense<0.000000e+00> : vector<8x128xf32>
    %25 = tpu.matmul %23, %24, %cst_16 {dimension_numbers = #tpu.dot_dimension_numbers<[1], [0], [0], [1], [0, 0, 1, 1], [], []>} : vector<8x128xbf16>, vector<128x128xbf16>, vector<8x128xf32> -> vector<8x128xf32>
    %c0_17 = arith.constant 0 : index
    %c0_18 = arith.constant 0 : index
    %26 = vector.load %arg7[%c0_17, %c0_18] : memref<1x128xf32, #tpu.memory_space<vmem>>, vector<1x128xf32>
    %27 = vector.broadcast %26 : vector<1x128xf32> to vector<8x128xf32>
    %28 = arith.addf %25, %27 : vector<8x128xf32>
    %29 = vector.extract_strided_slice %28 {offsets = [0, 0], sizes = [8, 8], strides = [1, 1]} : vector<8x128xf32> to vector<8x8xf32>
    %cst_19 = arith.constant dense<0xFF800000> : vector<8xf32>
    %30 = vector.multi_reduction <maximumf>, %29, %cst_19 [1] : vector<8x8xf32> to vector<8xf32>
    %31 = vector.shape_cast %30 : vector<8xf32> to vector<8x1xf32>
    %32 = vector.broadcast %31 : vector<8x1xf32> to vector<8x8xf32>
    %33 = arith.subf %29, %32 : vector<8x8xf32>
    %34 = math.exp %33 : vector<8x8xf32>
    %cst_20 = arith.constant dense<0.000000e+00> : vector<8xf32>
    %35 = vector.multi_reduction <add>, %34, %cst_20 [1] : vector<8x8xf32> to vector<8xf32>
    %36 = vector.shape_cast %35 : vector<8xf32> to vector<8x1xf32>
    %37 = vector.broadcast %36 : vector<8x1xf32> to vector<8x8xf32>
    %38 = arith.divf %34, %37 : vector<8x8xf32>
    %c0_21 = arith.constant 0 : index
    %c0_22 = arith.constant 0 : index
    %39 = vector.load %arg10[%c0_21, %c0_22] : memref<8x8xf32, #tpu.memory_space<vmem>>, vector<8x8xf32>
    tpu.vector_store %arg10[%c0_21, %c0_22], %38 {strides = array<i32>} : memref<8x8xf32, #tpu.memory_space<vmem>>, vector<8x8xf32>,
    %c0_23 = arith.constant 0 : index
    %c0_24 = arith.constant 0 : index
    %40 = vector.load %arg8[%c0_23, %c0_24] : memref<8x8xf32, #tpu.memory_space<vmem>>, vector<8x8xf32>
    %41 = arith.addf %29, %40 : vector<8x8xf32>
    %cst_25 = arith.constant dense<0xFF800000> : vector<8xf32>
    %42 = vector.multi_reduction <maximumf>, %41, %cst_25 [1] : vector<8x8xf32> to vector<8xf32>
    %43 = vector.shape_cast %42 : vector<8xf32> to vector<8x1xf32>
    %44 = tpu.iota {dimensions = array<i32: 1>} : vector<8x8xi32>
    %45 = vector.broadcast %43 : vector<8x1xf32> to vector<8x8xf32>
    %46 = arith.cmpf oge, %41, %45 : vector<8x8xf32>
    %c8_i32 = arith.constant 8 : i32
    %47 = vector.broadcast %c8_i32 : i32 to vector<8x8xi32>
    %48 = arith.select %46, %44, %47 : vector<8x8xi1>, vector<8x8xi32>
    %cst_26 = arith.constant dense<2147483647> : vector<8xi32>
    %49 = vector.multi_reduction <minsi>, %48, %cst_26 [1] : vector<8x8xi32> to vector<8xi32>
    %50 = vector.shape_cast %49 : vector<8xi32> to vector<8x1xi32>
    %c0_27 = arith.constant 0 : index
    %c0_28 = arith.constant 0 : index
    %51 = vector.load %arg9[%c0_27, %c0_28] : memref<8x1xi32, #tpu.memory_space<vmem>>, vector<8x1xi32>
    tpu.vector_store %arg9[%c0_27, %c0_28], %50 {strides = array<i32>} : memref<8x1xi32, #tpu.memory_space<vmem>>, vector<8x1xi32>,
    return
  }
  func.func @transform_0(%arg0: i32) -> (i32, i32) {
    %c0_i32 = arith.constant 0 : i32
    %c0_i32_0 = arith.constant 0 : i32
    return %arg0, %c0_i32 : i32, i32
  }
  func.func @transform_1(%arg0: i32) -> (i32, i32) {
    %c0_i32 = arith.constant 0 : i32
    %c0_i32_0 = arith.constant 0 : i32
    %c0_i32_1 = arith.constant 0 : i32
    return %c0_i32, %c0_i32_0 : i32, i32
  }
  func.func @transform_2(%arg0: i32) -> (i32, i32) {
    %c0_i32 = arith.constant 0 : i32
    %c0_i32_0 = arith.constant 0 : i32
    %c0_i32_1 = arith.constant 0 : i32
    return %c0_i32, %c0_i32_0 : i32, i32
  }
  func.func @transform_3(%arg0: i32) -> (i32, i32) {
    %c0_i32 = arith.constant 0 : i32
    %c0_i32_0 = arith.constant 0 : i32
    %c0_i32_1 = arith.constant 0 : i32
    return %c0_i32, %c0_i32_0 : i32, i32
  }
  func.func @transform_4(%arg0: i32) -> (i32, i32) {
    %c0_i32 = arith.constant 0 : i32
    %c0_i32_0 = arith.constant 0 : i32
    %c0_i32_1 = arith.constant 0 : i32
    return %c0_i32, %c0_i32_0 : i32, i32
  }
  func.func @transform_5(%arg0: i32) -> (i32, i32) {
    %c0_i32 = arith.constant 0 : i32
    %c0_i32_0 = arith.constant 0 : i32
    %c0_i32_1 = arith.constant 0 : i32
    return %c0_i32, %c0_i32_0 : i32, i32
  }
  func.func @transform_6(%arg0: i32) -> (i32, i32) {
    %c0_i32 = arith.constant 0 : i32
    %c0_i32_0 = arith.constant 0 : i32
    %c0_i32_1 = arith.constant 0 : i32
    return %c0_i32, %c0_i32_0 : i32, i32
  }
  func.func @transform_7(%arg0: i32) -> (i32, i32) {
    %c0_i32 = arith.constant 0 : i32
    %c0_i32_0 = arith.constant 0 : i32
    return %arg0, %c0_i32 : i32, i32
  }
  func.func @transform_8(%arg0: i32) -> (i32, i32) {
    %c0_i32 = arith.constant 0 : i32
    %c0_i32_0 = arith.constant 0 : i32
    return %arg0, %c0_i32 : i32, i32
  }
  func.func @transform_9(%arg0: i32) -> (i32, i32) {
    %c0_i32 = arith.constant 0 : i32
    %c0_i32_0 = arith.constant 0 : i32
    return %arg0, %c0_i32 : i32, i32
  }
}

</mosaic_0001>

<bundles_post_ra>
// kernel: discrete_policy_net_forward.1
= control target key start
LH: loop header
LB: loop body
LE: loop exit
PB: predicated region body
PF: predicated region fallthrough
CT: control target
= control target key end

     0   :  { %15 = vsyncpa [#allocation3], 0  ;;  %s808_s0 = inlined_call_operand.hbm [shape: f32[8,16], index: 0, kind: input, shape index: {}]   ;;  %s809_s1 = inlined_call_operand.hbm [shape: bf16[16,128], index: 1, kind: input, shape index: {}]   ;;  %s810_s2 = inlined_call_operand.vmem [shape: f32[1,128], index: 2, kind: input, shape index: {}]   ;;  %s811_s3 = inlined_call_operand.vmem [shape: bf16[128,128], index: 3, kind: input, shape index: {}]   ;;  %s812_s4 = inlined_call_operand.vmem [shape: f32[1,128], index: 4, kind: input, shape index: {}]   ;;  %s813_s5 = inlined_call_operand.hbm [shape: bf16[128,128], index: 5, kind: input, shape index: {}]   ;;  %s814_s6 = inlined_call_operand.vmem [shape: f32[1,128], index: 6, kind: input, shape index: {}]   ;;  %s815_s7 = inlined_call_operand.vmem [shape: f32[8,8], index: 7, kind: input, shape index: {}]   ;;  %s816_s8 = inlined_call_operand.vmem [shape: s32[8,1], index: 8, kind: output, shape index: {0}]   ;;  %s817_s9 = inlined_call_operand.hbm [shape: f32[8,8], index: 9, kind: output, shape index: {1}]  }
   0x1   :  { %16 = vsyncpa [#allocation6], 0 }
   0x2   :  { %17 = vsyncpa [#allocation4], 0  ;;  %s632_s30 = smov [#allocation5]   ;;  %s538_s13 = scalar_lea.hbm %s809_s1, 128 }
   0x3   :  { %s33_s10 = sshll.u32 %s632_s30, 4  ;;  %p539_p0 = scmp.ne.s32.totalorder %s809_s1, %s538_s13  ;;  %s34_s10 = int_to_ptr.vmem [resolvable:$true] %s33_s10 }
   0x4   :  { %p542_p1 = scmp.lt.u32.totalorder %s538_s13, %s809_s1 }
   0x6   :  { %p544_p2 = pnand %p542_p1, %p539_p0 }
   0x8   :  { %547 = shalt.err (!%p544_p2)
}
   0x9   :  { %s548_s18 = scalar_lea.vmem %s34_s10, 128  ;;  %p553_p4 = scmp.lt.s32.totalorder %s34_s10, %s34_s10 }
   0xa   :  { %p549_p3 = scmp.ne.s32.totalorder %s34_s10, %s548_s18  ;;  %p554_p5 = scmp.lt.s32.totalorder %s548_s18, %s548_s18 }
   0xc   :  { %p555_p6 = por %p554_p5, %p553_p4 }
   0xe   :  { %p556_p7 = pnand %p555_p6, %p549_p3 }
  0x10   :  { %559 = shalt.err (!%p556_p7)
}
  0x11   :  { %s633_s19 = smov 64   ;;  %s634_s20 = smov 4  }
  0x12   :  { %39 = dma.hbm_to_vmem [thread:$0]  %s809_s1, 128, %s34_s10, [#allocation6], %s633_s19, %s633_s19, %s634_s20  }
  0x13   :  { %s635_s23 = smov [#allocation2]   ;;  %s636_s25 = smov [#allocation7]  }
  0x14   :  { %s24_s24 = sshll.u32 %s635_s23, 4  ;;  %s51_s26 = sshll.u32 %s636_s25, 4  ;;  %s25_s24 = int_to_ptr.vmem [resolvable:$true] %s24_s24  ;;  %s52_s26 = int_to_ptr.vmem [resolvable:$true] %s51_s26 }
  0x15   :  { %s560_s29 = scalar_lea.hbm %s808_s0, 128 }
  0x16   :  { %p561_p8 = scmp.ne.s32.totalorder %s808_s0, %s560_s29  ;;  %p564_p9 = scmp.lt.u32.totalorder %s560_s29, %s808_s0 }
  0x18   :  { %p566_p10 = pnand %p564_p9, %p561_p8 }
  0x1a   :  { %569 = shalt.err (!%p566_p10)
}
  0x1b   :  { %s570_s1 = scalar_lea.vmem %s25_s24, 128  ;;  %p575_p12 = scmp.lt.s32.totalorder %s25_s24, %s25_s24 }
  0x1c   :  { %p571_p11 = scmp.ne.s32.totalorder %s25_s24, %s570_s1  ;;  %p576_p13 = scmp.lt.s32.totalorder %s570_s1, %s570_s1 }
  0x1e   :  { %p577_p0 = por %p576_p13, %p575_p12 }
  0x20   :  { %p578_p1 = pnand %p577_p0, %p571_p11 }
  0x22   :  { %581 = shalt.err (!%p578_p1)
}
  0x23   :  { %27 = dma.hbm_to_vmem [thread:$0]  %s808_s0, 128, %s25_s24, [#allocation3]  }
  0x24   :  { %s582_s17 = scalar_lea.hbm %s813_s5, 1024 }
  0x25   :  { %p583_p2 = scmp.ne.s32.totalorder %s813_s5, %s582_s17  ;;  %p586_p3 = scmp.lt.u32.totalorder %s582_s17, %s813_s5 }
  0x27   :  { %p588_p4 = pnand %p586_p3, %p583_p2 }
  0x29   :  { %591 = shalt.err (!%p588_p4)
}
  0x2a   :  { %s592_s25 = scalar_lea.vmem %s52_s26, 1024  ;;  %p597_p6 = scmp.lt.s32.totalorder %s52_s26, %s52_s26 }
  0x2b   :  { %p593_p5 = scmp.ne.s32.totalorder %s52_s26, %s592_s25  ;;  %p598_p7 = scmp.lt.s32.totalorder %s592_s25, %s592_s25 }
  0x2d   :  { %p599_p8 = por %p598_p7, %p597_p6 }
  0x2f   :  { %p600_p9 = pnand %p599_p8, %p593_p5 }
  0x31   :  { %603 = shalt.err (!%p600_p9)
}
  0x32   :  { %57 = dma.hbm_to_vmem [thread:$0]  %s813_s5, 1024, %s52_s26, [#allocation6], %s633_s19, %s633_s19, %s634_s20  }
  0x33   :  { %626 = dma.done.wait [#allocation3], 128  }
  0x34   :  { %627 = vsyncadd [#allocation3], 4294967168 }
  0x35   :  { %628 = dma.done.wait [#allocation6], 1152  }
  0x36   :  { %629 = vsyncadd [#allocation6], 4294966144  ;;  %v637_v0 = vmov 0.0   ;;  %vm638_vm0 = vmmov 0   ;;  %v517_v1 = vld [vmem:[#allocation5] sm:$0xff]   ;;  %v72_v2 = vld [vmem:[#allocation2] sm:$0xff]  ;;  %v381_v48 = vlaneseq }
  0x37   :  { %463 = vmatprep.subr.bf16.mxu0 %v637_v0  ;;  %465 = vmatprep.mubr.msk.bf16.mxu0 %vm638_vm0, %v637_v0  ;;  %v73_v3 = vpack.c.bf16 %v72_v2, %v72_v2  ;;  %vm89_vm1 = vcmask 130048   ;;  %v518_v4 = vld [vmem:[%s811_s3] sm:$0xff]   ;;  %v519_v5 = vld [vmem:[%s811_s3 + $0x8] sm:$0xff]   ;;  %v520_v6 = vld [vmem:[%s811_s3 + $0x10] sm:$0xff]   ;;  %vm363_vm4 = vcmask 64512  }
  0x38   :  { %469 = vmatprep.subr.bf16.mxu1 %v637_v0  ;;  %485 = vmatprep.mubr.msk.bf16.mxu1 %vm638_vm0, %v637_v0  ;;  %v521_v7 = vld [vmem:[%s811_s3 + $0x18] sm:$0xff]   ;;  %v522_v8 = vld [vmem:[%s811_s3 + $0x20] sm:$0xff]   ;;  %v523_v9 = vld [vmem:[%s811_s3 + $0x28] sm:$0xff]   ;;  %v382_v49 = vand.u32 127, %v381_v48 }
  0x39   :  { %464 = vmatpush3.bf16.msra.mxu0 %v517_v1  ;;  %470 = vmatpush3.bf16.msra.mxu1 %v518_v4  ;;  %v524_v10 = vld [vmem:[%s811_s3 + $0x30] sm:$0xff]   ;;  %v525_v11 = vld [vmem:[%s811_s3 + $0x38] sm:$0xff]   ;;  %v528_v14 = vld [vmem:[#allocation7 + $0x10] sm:$0xff]  }
  0x3a   :  { %489 = vmatprep.subr.bf16.mxu0 %v637_v0  ;;  %471 = vmatprep.subr.bf16.mxu1 %v637_v0  ;;  %v526_v12 = vld [vmem:[#allocation7] sm:$0xff]   ;;  %v527_v13 = vld [vmem:[#allocation7 + $0x8] sm:$0xff]   ;;  %v529_v15 = vld [vmem:[#allocation7 + $0x18] sm:$0xff]  }
  0x3b   :  { %v530_v16 = vld [vmem:[#allocation7 + $0x20] sm:$0xff]   ;;  %v531_v17 = vld [vmem:[#allocation7 + $0x28] sm:$0xff]   ;;  %v422_v18 = vld [vmem:[%s810_s2] ss:$0 sm:$0xff] }
  0x3c   :  { %466 = vmatmul.mubr.msk.bf16.vlgmr.msra.gmra.mrb[0].mxu0 %vm89_vm1, %v73_v3  ;;  %v532_v27 = vld [vmem:[#allocation7 + $0x30] sm:$0xff]   ;;  %v533_v28 = vld [vmem:[#allocation7 + $0x38] sm:$0xff]  }
  0x3d   :  { %505 = vmatprep.mubr.msk.bf16.mxu0 %vm638_vm0, %v637_v0  ;;  %472 = vmatpush3.bf16.msra.mxu1 %v519_v5  ;;  %v425_v29 = vld [vmem:[%s812_s4] ss:$0 sm:$0xff]  ;;  %s639_s4 = smov [#allocation8]  }
  0x3e   :  { %473 = vmatprep.subr.bf16.mxu1 %v637_v0  ;;  %490 = vmatpush3.bf16.msra.mxu0 %v526_v12  ;;  %v434_v38 = vld [vmem:[%s814_s6] ss:$0 sm:$0xff]  ;;  %s410_s6 = sshll.u32 %s639_s4, 4  ;;  %s411_s6 = int_to_ptr.vmem [resolvable:$true] %s410_s6 }
  0x3f   :  { %491 = vmatprep.subr.bf16.mxu0 %v637_v0  ;;  %v376_v40 = vld [vmem:[%s815_s7] sm:$0xff]  ;;  %s604_s7 = scalar_lea.vmem %s411_s6, 128  ;;  %p609_p11 = scmp.lt.s32.totalorder %s411_s6, %s411_s6 }
  0x40   :  { %p605_p10 = scmp.ne.s32.totalorder %s411_s6, %s604_s7  ;;  %p610_p12 = scmp.lt.s32.totalorder %s604_s7, %s604_s7 }
  0x41   :  { %474 = vmatpush3.bf16.msra.mxu1 %v520_v6 }
  0x42   :  { %475 = vmatprep.subr.bf16.mxu1 %v637_v0  ;;  %492 = vmatpush3.bf16.msra.mxu0 %v527_v13  ;;  %p611_p13 = por %p610_p12, %p609_p11 }
  0x43   :  { %493 = vmatprep.subr.bf16.mxu0 %v637_v0 }
  0x44   :  { %p612_p0 = pnand %p611_p13, %p605_p10 }
  0x45   :  { %476 = vmatpush3.bf16.msra.mxu1 %v521_v7 }
  0x46   :  { %477 = vmatprep.subr.bf16.mxu1 %v637_v0  ;;  %494 = vmatpush3.bf16.msra.mxu0 %v528_v14 }
  0x47   :  { %495 = vmatprep.subr.bf16.mxu0 %v637_v0 }
  0x49   :  { %478 = vmatpush3.bf16.msra.mxu1 %v522_v8 }
  0x4a   :  { %479 = vmatprep.subr.bf16.mxu1 %v637_v0  ;;  %496 = vmatpush3.bf16.msra.mxu0 %v529_v15 }
  0x4b   :  { %497 = vmatprep.subr.bf16.mxu0 %v637_v0 }
  0x4d   :  { %480 = vmatpush3.bf16.msra.mxu1 %v523_v9 }
  0x4e   :  { %481 = vmatprep.subr.bf16.mxu1 %v637_v0  ;;  %498 = vmatpush3.bf16.msra.mxu0 %v530_v16 }
  0x4f   :  { %499 = vmatprep.subr.bf16.mxu0 %v637_v0 }
  0x51   :  { %482 = vmatpush3.bf16.msra.mxu1 %v524_v10 }
  0x52   :  { %483 = vmatprep.subr.bf16.mxu1 %v637_v0  ;;  %500 = vmatpush3.bf16.msra.mxu0 %v531_v17 }
  0x53   :  { %501 = vmatprep.subr.bf16.mxu0 %v637_v0 }
  0x55   :  { %484 = vmatpush3.bf16.msra.mxu1 %v525_v11 }
  0x56   :  { %502 = vmatpush3.bf16.msra.mxu0 %v532_v27 }
  0x57   :  { %503 = vmatprep.subr.bf16.mxu0 %v637_v0 }
  0x5a   :  { %504 = vmatpush3.bf16.msra.mxu0 %v533_v28 }
 0x10f   :  { %v127_v19 = vpop.f32.mrb[0].mxu0 }
 0x110   :  { %v128_v20 = vadd.f32 %v422_v18, %v127_v19  ;;  %v467_v21 = vpop.f32.mrb[1].mxu0 }
 0x111   :  { %v130_v22 = vpop.f32.mrb[2].mxu0 }
 0x112   :  { %vm133_vm2 = vcmp.ge.f32.partialorder %v128_v20, 0.0  ;;  %v134_v23 = vmul.f32 0.01, %v128_v20  ;;  %v468_v24 = vpop.f32.mrb[3].mxu0 }
 0x114   :  { %v135_v25 = vsel %vm133_vm2, %v128_v20, %v134_v23 }
 0x115   :  { %v136_v26 = vpack.c.bf16 %v135_v25, %v135_v25 }
 0x117   :  { %486 = vmatmul.mubr.bf16.vlgmr.msra.gmra.mrb[0].mxu1 %v136_v26 }
 0x1ea   :  { %v242_v30 = vpop.f32.mrb[0].mxu1 }
 0x1eb   :  { %v243_v31 = vadd.f32 %v425_v29, %v242_v30  ;;  %v487_v32 = vpop.f32.mrb[1].mxu1 }
 0x1ec   :  { %v245_v33 = vpop.f32.mrb[2].mxu1 }
 0x1ed   :  { %vm248_vm3 = vcmp.ge.f32.partialorder %v243_v31, 0.0  ;;  %v249_v34 = vmul.f32 0.01, %v243_v31  ;;  %v488_v35 = vpop.f32.mrb[3].mxu1 }
 0x1ef   :  { %v250_v36 = vsel %vm248_vm3, %v243_v31, %v249_v34 }
 0x1f0   :  { %v251_v37 = vpack.c.bf16 %v250_v36, %v250_v36 }
 0x1f2   :  { %506 = vmatmul.mubr.bf16.vlgmr.msra.gmra.mrb[4].mxu0 %v251_v37 }
 0x2c5   :  { %v357_v39 = vpop.f32.mrb[4].mxu0 }
 0x2c6   :  { %v358_v41 = vadd.f32 %v434_v38, %v357_v39  ;;  %v507_v42 = vpop.f32.mrb[5].mxu0 }
 0x2c7   :  { %v360_v43 = vpop.f32.mrb[6].mxu0 }
 0x2c8   :  { %v508_v44 = vpop.f32.mrb[7].mxu0  ;;  %v377_v45 = vadd.f32 %v376_v40, %v358_v41  ;;  %v364_v47 = vsel %vm363_vm4, %v358_v41, -inf }
 0x2ca   :  { %v378_v46 = vsel %vm363_vm4, %v377_v45, -inf }
 0x2cb   :  { %379 = vmax.xlane.f32.xlu0 %v378_v46 }
 0x2cf   :  { %365 = vmax.xlane.f32.xlu0 %v364_v47 }
 0x358   :  { %v380_v50 = vpop.xlane.xlu0 %379 }
 0x359   :  { %vm383_vm5 = vcmp.ge.f32.partialorder %v377_v45, %v380_v50 }
 0x35a   :  { %v384_v51 = vsel %vm383_vm5, %v382_v49, 8 }
 0x35b   :  { %v385_v52 = vsel %vm363_vm4, %v384_v51, 2147483647 }
 0x35c   :  { %v366_v53 = vpop.xlane.xlu0 %365  ;;  %v387_v54 = vshra.s32 %v385_v52, 16  ;;  %v386_v60 = vand.u32 65535, %v385_v52 }
 0x35d   :  { %v367_v55 = vsub.f32 %v358_v41, %v366_v53 }
 0x35e   :  { %v389_v56 = vcvt.s32.f32 %v387_v54  ;;  %v388_v62 = vcvt.s32.f32 %v386_v60 }
 0x35f   :  { %v368_v57 = vmul.f32 1.442695, %v367_v55 }
 0x360   :  { %390 = vmin.xlane.f32.xlu1 %v389_v56 }
 0x361   :  { %534 = vpow2.f32 %v368_v57 }
 0x36b   :  { %v535_v58 = vpop.eup %534 }
 0x36c   :  { %v370_v59 = vsel %vm363_vm4, %v535_v58, 0.0 }
 0x36d   :  { %371 = vadd.xlane.f32.xlu1 %v370_v59 }
 0x3ed   :  { %v391_v61 = vpop.xlane.xlu1 %390 }
 0x3ee   :  { %vm392_vm6 = vcmp.eq.f32.partialorder %v389_v56, %v391_v61 }
 0x3ef   :  { %v393_v63 = vsel %vm392_vm6, %v388_v62, inf }
 0x3f0   :  { %394 = vmin.xlane.f32.xlu0 %v393_v63 }
 0x3fa   :  { %v372_v0 = vpop.xlane.xlu1 %371 }
 0x3fb   :  { %536 = vrcp.f32 %v372_v0 }
 0x405   :  { %v537_v1 = vpop.eup %536 }
 0x406   :  { %v374_v2 = vmul.f32 %v537_v1, %v535_v58 }
 0x408   :  { %375 = vst.msk [vmem:[#allocation8] sm:$0xff] %vm363_vm4, %v374_v2 }
 0x409   :  { %615 = shalt.err (!%p612_p0)
}
 0x40a   :  { %s616_s5 = scalar_lea.hbm %s817_s9, 128 }
 0x40b   :  { %p617_p1 = scmp.ne.s32.totalorder %s817_s9, %s616_s5  ;;  %p620_p2 = scmp.lt.u32.totalorder %s616_s5, %s817_s9 }
 0x40d   :  { %p622_p3 = pnand %p620_p2, %p617_p1 }
 0x40f   :  { %625 = shalt.err (!%p622_p3)
}
 0x410   :  { %413 = dma.vmem_to_hbm [thread:$0]  %s411_s6, 128, %s817_s9, [#allocation4]   ;;  %v397_v3 = vcvt.f32.s32 %v391_v61  ;;  %vm400_vm7 = vcmask 7168  }
 0x412   :  { %v398_v5 = vshll.u32 %v397_v3, 16 }
 0x47d   :  { %v395_v4 = vpop.xlane.xlu0 %394 }
 0x47e   :  { %v396_v6 = vcvt.f32.s32 %v395_v4 }
 0x480   :  { %v399_v7 = vadd.s32 %v398_v5, %v396_v6 }
 0x482   :  { %401 = vst.msk [vmem:[%s816_s8] sm:$0xff] %vm400_vm7, %v399_v7 }
 0x483   :  { %630 = dma.done.wait [#allocation4], 128  }
 0x484   :  { %631 = vsyncadd [#allocation4], 4294967168 }
 0x485   :  { %419 = vsyncpa [#allocation3], 1 }
 0x486   :  { %420 = vsyncpa [#allocation6], 1 }
 0x487   :  { %421 = vsyncpa [#allocation4], 1 }

</bundles_post_ra>
